<compile_context>
chip_gen: v7x
topology: tpu7x:2x2x1
jax: 0.10.0
libtpu: 0.0.40
codegen_flags: <defaults>
</compile_context>

<pallas_src>
import jax
import jax.numpy as jnp
from jax.experimental import pallas as pl
from jax.experimental.pallas import tpu as pltpu

_SUBLANE = 8
_LANE = 128
_MiB = 1024 * 1024
_MIN_GRID_STEPS = 8                      # keep the pipeline + megacore busy
_COL_CANDIDATES = (8192, 4096, 2048, 1024, 512, 256, 128)


def _ceil_div(a, b):
    return -(-a // b)


def _round_up(a, b):
    return _ceil_div(a, b) * b


def _vmem_limit_and_tile_bytes():
    """Generation-aware scoped-VMEM limit and per-block byte target."""
    try:
        cap = int(getattr(pltpu.get_tpu_info(), "vmem_capacity_bytes",
                          64 * _MiB))
    except Exception:
        cap = 64 * _MiB                  # most restrictive case (v7x per-TC)
    # in + out, double-buffered => ~4x tile bytes live at once; keep that well
    # under the scoped limit, and the limit well under physical capacity.
    vmem_limit = min(cap * 3 // 4, 64 * _MiB)    # 48 MiB on v7x, 64 MiB v5e/v6e
    tile_bytes = min(8 * _MiB, vmem_limit // 8)  # 6 MiB on v7x, 8 MiB v5e/v6e
    return vmem_limit, tile_bytes


def _widest_cols(n):
    """Widest multiple-of-128 column count that divides n (None if none)."""
    for w in _COL_CANDIDATES:
        if n % w == 0:
            return w
    return None


def _rbf_kernel(neg_inv_s2_ref, x_ref, o_ref):
    # neg_inv_s2_ref: SMEM (1,) f32 scalar = -1/scale^2 (precomputed outside)
    # x_ref / o_ref : VMEM (block_rows, cols) tiles in the input's dtype
    c = neg_inv_s2_ref[0]
    x = x_ref[...].astype(jnp.float32)   # upcast in-register (hidden under DMA)
    o_ref[...] = jnp.exp((x * x) * c).astype(o_ref.dtype)


def _rbf_2d(x2d: jax.Array, neg_inv_s2: jax.Array) -> jax.Array:
    """Run the RBF kernel over a (rows, cols) view; cols % 128 == 0."""
    rows, cols = x2d.shape
    dtype = x2d.dtype
    itemsize = jnp.dtype(dtype).itemsize
    vmem_limit, tile_bytes = _vmem_limit_and_tile_bytes()

    # Sublane granularity of a native tile for this dtype (8 f32, 16 bf16, ...).
    row_align = _SUBLANE * max(1, 4 // itemsize)

    if rows < row_align:
        block_rows = rows                # block dim == full array dim: allowed
    else:
        # Rows per block from the byte target ...
        block_rows = max(row_align,
                         (tile_bytes // (cols * itemsize)) // row_align * row_align)
        # ... but never collapse to a single block on mid/large inputs: keep at
        # least _MIN_GRID_STEPS steps so the v7x TensorCores can split the
        # "parallel" axis and input/output DMAs overlap with compute.
        rows_for_min_grid = max(
            row_align,
            _round_up(_ceil_div(rows, _MIN_GRID_STEPS), row_align))
        block_rows = min(block_rows, rows_for_min_grid)

    grid = (_ceil_div(rows, block_rows),)

    total = rows * cols
    cost = pl.CostEstimate(flops=2 * total,
                           transcendentals=total,
                           bytes_accessed=2 * total * itemsize)

    return pl.pallas_call(
        _rbf_kernel,
        out_shape=jax.ShapeDtypeStruct((rows, cols), dtype),
        grid=grid,
        in_specs=[
            pl.BlockSpec(memory_space=pltpu.MemorySpace.SMEM),    # -1/scale^2
            pl.BlockSpec((block_rows, cols), lambda i: (i, 0)),   # x tile
        ],
        out_specs=pl.BlockSpec((block_rows, cols), lambda i: (i, 0)),
        compiler_params=pltpu.CompilerParams(
            dimension_semantics=("parallel",),
            vmem_limit_bytes=vmem_limit,
        ),
        cost_estimate=cost,
    )(neg_inv_s2, x2d)


def rbf_activation(x: jax.Array, scale: jax.Array) -> jax.Array:
    """Pallas implementation of RBFActivation.forward: exp(-x^2 / scale^2)."""
    orig_shape = x.shape
    orig_dtype = x.dtype
    total = x.size

    if total == 0:
        return x

    # Hoist the scalar math: one divide outside, kernel does only x*x*c.
    neg_inv_s2 = (-1.0 / (jnp.asarray(scale, jnp.float32) ** 2)).reshape(1)

    x_flat = x.reshape(-1)

    # Fast path: flat size is a multiple of 128 -> lane-dense 2D view for free.
    cols = _widest_cols(total)
    if cols is not None:
        out2d = _rbf_2d(x_flat.reshape(total // cols, cols), neg_inv_s2)
        return out2d.reshape(orig_shape)

    # Ragged flat size: kernel on the aligned prefix (pure reshape, no pad or
    # extra full-tensor HBM pass) + a tiny (<1024 element) jnp tail, then stitch.
    prefix = (total // (_SUBLANE * _LANE)) * (_SUBLANE * _LANE)
    pieces = []
    if prefix:
        cols_p = _widest_cols(prefix)
        p2d = _rbf_2d(x_flat[:prefix].reshape(prefix // cols_p, cols_p),
                      neg_inv_s2)
        pieces.append(p2d.reshape(-1))
    tail = x_flat[prefix:].astype(jnp.float32)
    pieces.append(jnp.exp((tail * tail) * neg_inv_s2[0]).astype(orig_dtype))
    return jnp.concatenate(pieces).reshape(orig_shape)


if __name__ == "__main__":
    key = jax.random.PRNGKey(0)
    scale = jnp.asarray(2.0, dtype=jnp.float32)   # nn.Parameter(scale) init

    def ref(x):
        return jnp.exp(-(x.astype(jnp.float32) ** 2)
                       / (scale ** 2)).astype(x.dtype)

    # 1) NCHW input, aligned flat size -> single zero-copy reshape path.
    x1 = jax.random.normal(key, (2, 4, 16, 16), dtype=jnp.float32)
    y1 = jax.block_until_ready(rbf_activation(x1, scale))
    assert y1.shape == x1.shape and y1.dtype == x1.dtype
    assert jnp.allclose(y1, ref(x1), atol=1e-6, rtol=1e-5)

    # 2) Aligned flat size whose rows don't divide the block -> exercises the
    #    masked edge block on the last grid step.
    x2 = jax.random.normal(jax.random.PRNGKey(1), (2, 4, 36, 32),
                           dtype=jnp.float32)
    y2 = jax.block_until_ready(rbf_activation(x2, scale))
    assert y2.shape == x2.shape and y2.dtype == x2.dtype
    assert jnp.allclose(y2, ref(x2), atol=1e-6, rtol=1e-5)

    # 3) Ragged flat size -> aligned-prefix kernel + tiny jnp tail.
    x3 = jax.random.normal(jax.random.PRNGKey(2), (2, 3, 13, 17),
                           dtype=jnp.float32)
    y3 = jax.block_until_ready(rbf_activation(x3, scale))
    assert y3.shape == x3.shape and y3.dtype == x3.dtype
    assert jnp.allclose(y3, ref(x3), atol=1e-6, rtol=1e-5)

    # 4) bf16 input (upcast is in-register; HBM traffic stays bf16).
    x4 = jax.random.normal(jax.random.PRNGKey(3), (2, 4, 16, 16),
                           dtype=jnp.bfloat16)
    y4 = jax.block_until_ready(rbf_activation(x4, scale))
    assert y4.shape == x4.shape and y4.dtype == x4.dtype
    assert jnp.allclose(y4.astype(jnp.float32), ref(x4).astype(jnp.float32),
                        atol=1e-2, rtol=1e-2)

    print("KERNEL_OK")
</pallas_src>

<mosaic_0001>
module attributes {stable_mosaic.version = 11 : i64} {
  func.func @_rbf_kernel(%arg0: i32, %arg1: memref<1xf32, #tpu.memory_space<smem>>, %arg2: memref<1x2048xf32, #tpu.memory_space<vmem>>, %arg3: memref<1x2048xf32, #tpu.memory_space<vmem>>) attributes {dimension_semantics = [#tpu.dimension_semantics<parallel>], iteration_bounds = array<i64: 1>, scalar_prefetch = 0 : i64, scratch_operands = 0 : i64, tpu.core_type = #tpu.core_type<tc>, window_params = [{transform_indices = @transform_0, window_bounds = array<i64: 1>}, {transform_indices = @transform_1, window_bounds = array<i64: 1, 2048>}, {transform_indices = @transform_2, window_bounds = array<i64: 1, 2048>}]} {
    %c0 = arith.constant 0 : index
    %0 = memref.load %arg1[%c0] : memref<1xf32, #tpu.memory_space<smem>>
    %c0_0 = arith.constant 0 : index
    %c0_1 = arith.constant 0 : index
    %1 = vector.load %arg2[%c0_0, %c0_1] : memref<1x2048xf32, #tpu.memory_space<vmem>>, vector<1x2048xf32>
    %2 = arith.mulf %1, %1 : vector<1x2048xf32>
    %3 = vector.broadcast %0 : f32 to vector<1x2048xf32>
    %4 = arith.mulf %2, %3 : vector<1x2048xf32>
    %5 = math.exp %4 : vector<1x2048xf32>
    %c0_2 = arith.constant 0 : index
    %c0_3 = arith.constant 0 : index
    %6 = vector.load %arg3[%c0_2, %c0_3] : memref<1x2048xf32, #tpu.memory_space<vmem>>, vector<1x2048xf32>
    tpu.vector_store %arg3[%c0_2, %c0_3], %5 {strides = array<i32>} : memref<1x2048xf32, #tpu.memory_space<vmem>>, vector<1x2048xf32>,
    return
  }
  func.func @transform_0(%arg0: i32) -> i32 {
    %c0_i32 = arith.constant 0 : i32
    %c0_i32_0 = arith.constant 0 : i32
    return %c0_i32 : i32
  }
  func.func @transform_1(%arg0: i32) -> (i32, i32) {
    %c0_i32 = arith.constant 0 : i32
    %c0_i32_0 = arith.constant 0 : i32
    return %arg0, %c0_i32 : i32, i32
  }
  func.func @transform_2(%arg0: i32) -> (i32, i32) {
    %c0_i32 = arith.constant 0 : i32
    %c0_i32_0 = arith.constant 0 : i32
    return %arg0, %c0_i32 : i32, i32
  }
}

</mosaic_0001>

<bundles_post_ra>
// kernel: tpu_custom_call.1
= control target key start
LH: loop header
LB: loop body
LE: loop exit
PB: predicated region body
PF: predicated region fallthrough
CT: control target
= control target key end

     0   :  { %8 = vsyncpa [#allocation4], 0  ;;  %s152_s0 = inlined_call_operand.<no memory space> [shape: f32[1], index: 0, kind: input, shape index: {}]   ;;  %s153_s1 = inlined_call_operand.hbm [shape: f32[1,2048], index: 1, kind: input, shape index: {}]   ;;  %s154_s2 = inlined_call_operand.hbm [shape: f32[1,2048], index: 2, kind: output, shape index: {}]  }
   0x1   :  { %9 = vsyncpa [#allocation5], 0  ;;  %s108_s9 = smov [#allocation3]   ;;  %s60_s13 = scalar_lea.hbm %s153_s1, 256 }
   0x2   :  { %s18_s10 = sshll.u32 %s108_s9, 4  ;;  %p61_p0 = scmp.ne.s32.totalorder %s153_s1, %s60_s13  ;;  %s19_s10 = int_to_ptr.vmem [resolvable:$true] %s18_s10 }
   0x3   :  { %p64_p1 = scmp.lt.u32.totalorder %s60_s13, %s153_s1 }
   0x5   :  { %p66_p2 = pnand %p64_p1, %p61_p0 }
   0x7   :  { %69 = shalt.err (!%p66_p2)
}
   0x8   :  { %s70_s18 = scalar_lea.vmem %s19_s10, 256  ;;  %p75_p4 = scmp.lt.s32.totalorder %s19_s10, %s19_s10 }
   0x9   :  { %p71_p3 = scmp.ne.s32.totalorder %s19_s10, %s70_s18  ;;  %p76_p5 = scmp.lt.s32.totalorder %s70_s18, %s70_s18 }
   0xb   :  { %p77_p6 = por %p76_p5, %p75_p4 }
   0xd   :  { %p78_p7 = pnand %p77_p6, %p71_p3 }
   0xf   :  { %81 = shalt.err (!%p78_p7)
}
  0x10   :  { %21 = dma.hbm_to_vmem [thread:$0]  %s153_s1, 256, %s19_s10, [#allocation4]  }
  0x11   :  { %104 = dma.done.wait [#allocation4], 256  }
  0x12   :  { %105 = vsyncadd [#allocation4], 4294967040  ;;  %v26_v0 = vld [vmem:[#allocation3] sm:$0xff]  ;;  %v30_v1 = vstv %s152_s0  ;;  %v27_v2 = vld [vmem:[#allocation3 + $0x8] sm:$0xff]  ;;  %s109_s23 = smov [#allocation6]  }
  0x13   :  { %v28_v3 = vmul.f32 %v26_v0, %v26_v0  ;;  %v29_v4 = vmul.f32 %v27_v2, %v27_v2  ;;  %s45_s24 = sshll.u32 %s109_s23, 4  ;;  %s46_s24 = int_to_ptr.vmem [resolvable:$true] %s45_s24 }
  0x14   :  { %s82_s1 = scalar_lea.vmem %s46_s24, 256  ;;  %p87_p9 = scmp.lt.s32.totalorder %s46_s24, %s46_s24 }
  0x15   :  { %v31_v5 = vmul.f32 %v30_v1, %v28_v3  ;;  %v32_v6 = vmul.f32 %v30_v1, %v29_v4  ;;  %p83_p8 = scmp.ne.s32.totalorder %s46_s24, %s82_s1  ;;  %p88_p10 = scmp.lt.s32.totalorder %s82_s1, %s82_s1 }
  0x17   :  { %v33_v7 = vmul.f32 1.442695, %v31_v5  ;;  %v35_v8 = vmul.f32 1.442695, %v32_v6  ;;  %p89_p11 = por %p88_p10, %p87_p9 }
  0x19   :  { %56 = vpow2.f32 %v33_v7  ;;  %p90_p12 = pnand %p89_p11, %p83_p8 }
  0x1a   :  { %58 = vpow2.f32 %v35_v8 }
  0x23   :  { %v57_v9 = vpop.eup %56 }
  0x24   :  { %v59_v10 = vpop.eup %58  ;;  %37 = vst [vmem:[#allocation6] sm:$0xff] %v57_v9 }
  0x25   :  { %38 = vst [vmem:[#allocation6 + $0x8] sm:$0xff] %v59_v10 }
  0x26   :  { %93 = shalt.err (!%p90_p12)
}
  0x27   :  { %s94_s26 = scalar_lea.hbm %s154_s2, 256 }
  0x28   :  { %p95_p13 = scmp.ne.s32.totalorder %s154_s2, %s94_s26  ;;  %p98_p0 = scmp.lt.u32.totalorder %s94_s26, %s154_s2 }
  0x2a   :  { %p100_p1 = pnand %p98_p0, %p95_p13 }
  0x2c   :  { %103 = shalt.err (!%p100_p1)
}
  0x2d   :  { %48 = dma.vmem_to_hbm [thread:$0]  %s46_s24, 256, %s154_s2, [#allocation5]  }
  0x2e   :  { %106 = dma.done.wait [#allocation5], 256  }
  0x2f   :  { %107 = vsyncadd [#allocation5], 4294967040 }
  0x30   :  { %52 = vsyncpa [#allocation4], 1 }
  0x31   :  { %53 = vsyncpa [#allocation5], 1 }

</bundles_post_ra>
